<compile_context>
chip_gen: v6e
topology: v6e:2x2x1
jax: 0.10.0
libtpu: 0.0.40
codegen_flags: <defaults>
</compile_context>

<pallas_src>
import jax
import jax.numpy as jnp
from jax.experimental import pallas as pl
from jax.experimental.pallas import tpu as pltpu

VIDEO_FEAT = 512   # r3d_18.fc.in_features
AUDIO_HID = 768    # wav2vec2-base hidden size
EMB = 128          # video_cnn.fc / audio_fc output width (folded away by fusion)
HIDDEN = 64        # fc[0] output
OUT_COLS = 8       # narrow output block; column 0 holds sigmoid(logit)


def head_kernel(vfeat_ref, ahid_ref, wv_ref, wa_ref, misc_ref, out_ref):
    """Fused trainable head for one batch tile (Dropout = identity at inference).

    wv_ref  = wv  @ w1[:128]        (512, 64) bf16
    wa_ref  = (wa / T) @ w1[128:]   (768, 64) bf16
    misc_ref rows: 0 = b1' (= bv@w1v + ba@w1a + b1), 1 = w2 row, 2 = [b2, 0,...]
    """
    # Audio branch: time-sum in f32 (the mean's 1/T is folded into wa_ref).
    a_sum = jnp.sum(ahid_ref[...], axis=1, dtype=jnp.float32)          # (bt, 768)

    # Pre-fused fc[0]: concat(video_fc(v), audio_fc(a)) @ w1 + b1
    #   == vfeat @ (wv@w1v) + a_sum @ ((wa/T)@w1a) + (bv@w1v + ba@w1a + b1)
    h = (jnp.dot(vfeat_ref[...].astype(jnp.bfloat16), wv_ref[...],
                 preferred_element_type=jnp.float32)
         + jnp.dot(a_sum.astype(jnp.bfloat16), wa_ref[...],
                   preferred_element_type=jnp.float32)
         + misc_ref[0:1, :])                                           # (bt, 64)
    h = jnp.maximum(h, 0.0)                                            # ReLU

    # fc[3]: Linear(64, 1) as VPU multiply + lane reduce (avoid N=1 MXU matmul).
    logit = (jnp.sum(h * misc_ref[1:2, :], axis=-1, keepdims=True)
             + misc_ref[2:3, 0:1])                                     # (bt, 1)
    out_ref[...] = jnp.broadcast_to(jax.nn.sigmoid(logit), out_ref.shape)


def prepare_head_params(p, t_frames):
    """Fuse nn.Linear-style params into the form the kernel consumes (exact up to rounding)."""
    w1v = p["w1"][:EMB]                                    # (128, 64)
    w1a = p["w1"][EMB:]                                    # (128, 64)
    wv_fused = p["wv"] @ w1v                               # (512, 64)
    wa_fused = (p["wa"] @ w1a) / float(t_frames)           # (768, 64); mean's 1/T folded
    # bv / ba are linear up to the ReLU -> fold them exactly into b1.
    b1_fused = p["bv"] @ w1v + p["ba"] @ w1a + p["b1"]     # (1, 64)
    b2_row = jnp.zeros((1, HIDDEN), jnp.float32).at[0, 0].set(p["b2"][0, 0])
    misc = jnp.concatenate(
        [b1_fused, p["w2"].reshape(1, HIDDEN), b2_row], axis=0).astype(jnp.float32)
    return dict(wv=wv_fused.astype(jnp.bfloat16),
                wa=wa_fused.astype(jnp.bfloat16),
                misc=misc)                                 # (3, 64) f32


def _vmem_capacity_bytes():
    # Per-TensorCore VMEM; fall back to the smallest generation (v7x: 64 MiB).
    try:
        return int(pltpu.get_tpu_info().vmem_capacity_bytes)
    except Exception:
        return 64 * 1024 * 1024


def _plan_tiles(B, T, b_tile=None, min_grid_steps=4):
    """Pick the batch tile from T and the chip's VMEM; return (b_tile, vmem_limit)."""
    vmem_cap = _vmem_capacity_bytes()
    vmem_limit = (vmem_cap * 3) // 4        # 48 MiB on v7x, 96 MiB on v5e/v6e; < physical
    if b_tile is None:
        row_bytes = (2 * 4 * (T * AUDIO_HID + VIDEO_FEAT + OUT_COLS)   # double-buffered f32 I/O
                     + 4 * (AUDIO_HID + VIDEO_FEAT + 2 * HIDDEN)       # f32 temps (a_sum, h, ...)
                     + 2 * (AUDIO_HID + VIDEO_FEAT))                   # bf16 matmul operands
        weight_bytes = 2 * (2 * (VIDEO_FEAT + AUDIO_HID) * HIDDEN + 4 * 3 * HIDDEN)
        b_tile = max(8, (vmem_limit - weight_bytes) // row_bytes)
        b_tile = min(b_tile, 1024)          # 512-1024 amortizes per-step cost on v5e/v6e
        if B > 2 * 128:
            # Keep >= min_grid_steps steps so v7x's two TensorCores both get work
            # and cross-step DMA/compute overlap survives on all generations.
            b_tile = min(b_tile, max(128, -(-B // min_grid_steps)))
    if b_tile >= B:
        return B, vmem_limit                # single block: block dims == array dims
    return max(8, (b_tile // 8) * 8), vmem_limit


def matching_head(video_feat, audio_hidden, params, *, b_tile=None):
    """sigmoid(fc(concat(video_fc(video_feat), audio_fc(mean_t(audio_hidden)))))."""
    B = video_feat.shape[0]
    T = audio_hidden.shape[1]
    kp = prepare_head_params(params, T)
    b_tile, vmem_limit = _plan_tiles(B, T, b_tile)

    grid = (pl.cdiv(B, b_tile),)            # ragged last block handled by Pallas masking
    const2 = lambda i: (0, 0)               # weights fetched once, VMEM-resident

    in_bytes = (B * (T * AUDIO_HID * audio_hidden.dtype.itemsize
                     + VIDEO_FEAT * video_feat.dtype.itemsize)
                + (VIDEO_FEAT + AUDIO_HID) * HIDDEN * 2 + 3 * HIDDEN * 4)
    flops = 2 * B * (VIDEO_FEAT + AUDIO_HID) * HIDDEN + B * T * AUDIO_HID + 3 * B * HIDDEN

    out = pl.pallas_call(
        head_kernel,
        out_shape=jax.ShapeDtypeStruct((B, OUT_COLS), jnp.float32),
        grid=grid,
        in_specs=[
            pl.BlockSpec((b_tile, VIDEO_FEAT), lambda i: (i, 0)),        # f32, as produced
            pl.BlockSpec((b_tile, T, AUDIO_HID), lambda i: (i, 0, 0)),   # f32, as produced
            pl.BlockSpec((VIDEO_FEAT, HIDDEN), const2),                  # wv @ w1v   (bf16)
            pl.BlockSpec((AUDIO_HID, HIDDEN), const2),                   # (wa/T)@w1a (bf16)
            pl.BlockSpec((3, HIDDEN), const2),                           # [b1'; w2; b2]
        ],
        out_specs=pl.BlockSpec((b_tile, OUT_COLS), lambda i: (i, 0)),
        compiler_params=pltpu.CompilerParams(
            # batch axis is independent -> shard grid steps across v7x's 2 TensorCores
            dimension_semantics=("parallel",),
            vmem_limit_bytes=int(vmem_limit),        # always below physical per-TC VMEM
        ),
        cost_estimate=pl.CostEstimate(
            flops=int(flops),
            transcendentals=int(B),
            bytes_accessed=int(in_bytes + B * OUT_COLS * 4)),
    )(video_feat, audio_hidden, kp["wv"], kp["wa"], kp["misc"])

    return out[:, :1]   # column 0 holds sigmoid(logit)


def init_params(key):
    """Deterministic nn.Linear-style init (uniform +/- 1/sqrt(fan_in))."""
    def linear(k, fan_in, fan_out):
        kw, kb = jax.random.split(k)
        bound = 1.0 / float(fan_in) ** 0.5
        w = jax.random.uniform(kw, (fan_in, fan_out), jnp.float32, -bound, bound)
        b = jax.random.uniform(kb, (1, fan_out), jnp.float32, -bound, bound)
        return w, b

    k = jax.random.split(key, 4)
    wv, bv = linear(k[0], VIDEO_FEAT, EMB)      # video_cnn.fc: Linear(512, 128)
    wa, ba = linear(k[1], AUDIO_HID, EMB)       # audio_fc:     Linear(768, 128)
    w1, b1 = linear(k[2], 2 * EMB, HIDDEN)      # fc[0]:        Linear(256, 64)
    w2, b2 = linear(k[3], HIDDEN, 1)            # fc[3]:        Linear(64, 1)
    return dict(wv=wv, bv=bv, wa=wa, ba=ba, w1=w1, b1=b1, w2=w2, b2=b2)


def reference(video_feat, audio_hidden, p):
    """Plain-JAX f32 mirror of the PyTorch head."""
    v = video_feat @ p["wv"] + p["bv"]
    a = jnp.mean(audio_hidden, axis=1) @ p["wa"] + p["ba"]
    comb = jnp.concatenate([v, a], axis=1)
    h = jnp.maximum(comb @ p["w1"] + p["b1"], 0.0)
    return jax.nn.sigmoid(h @ p["w2"] + p["b2"])


if __name__ == "__main__":
    key = jax.random.PRNGKey(0)
    k_vid, k_aud, k_param, k_stub_v, k_stub_a, k_big = jax.random.split(key, 6)

    # Raw module inputs (small shapes): video (B, seq, C, H, W), audio (B, L).
    B, S, C, H, W = 2, 8, 3, 16, 16
    L = 1600
    video = jax.random.normal(k_vid, (B, S, C, H, W), jnp.float32)
    audio = jax.random.normal(k_aud, (B, L), jnp.float32)

    # TODO(synk): frozen pretrained r3d_18 3D-CNN backbone is not re-implemented;
    # stand in with a deterministic frozen projection to 512-d penultimate features.
    video_ncthw = jnp.transpose(video, (0, 2, 1, 3, 4))   # torch.transpose(video, 1, 2)
    w_stub_v = jax.random.normal(k_stub_v, (S * C * H * W, VIDEO_FEAT), jnp.float32) * 0.02
    video_feat = video_ncthw.reshape(B, -1) @ w_stub_v     # (B, 512)

    # TODO(synk): frozen pretrained Wav2Vec2 backbone is not re-implemented;
    # stand in with framing + a deterministic frozen projection to (B, T, 768).
    T = 8
    frames = audio.reshape(B, T, L // T)
    w_stub_a = jax.random.normal(k_stub_a, (L // T, AUDIO_HID), jnp.float32) * 0.02
    audio_hidden = frames @ w_stub_a                        # (B, 8, 768) ~ last_hidden_state

    params = init_params(k_param)

    out = matching_head(video_feat, audio_hidden, params)
    jax.block_until_ready(out)
    ref = reference(video_feat, audio_hidden, params)
    assert out.shape == (B, 1), out.shape
    assert jnp.allclose(out, ref, atol=2e-2, rtol=2e-2), (out, ref)

    # Ragged multi-step grid (no padding): B not a multiple of the tile.
    Bb = 20
    kv2, ka2 = jax.random.split(k_big)
    vf2 = jax.random.normal(kv2, (Bb, VIDEO_FEAT), jnp.float32)
    ah2 = jax.random.normal(ka2, (Bb, T, AUDIO_HID), jnp.float32)
    out2 = matching_head(vf2, ah2, params, b_tile=8)
    jax.block_until_ready(out2)
    ref2 = reference(vf2, ah2, params)
    assert out2.shape == (Bb, 1), out2.shape
    assert jnp.allclose(out2, ref2, atol=2e-2, rtol=2e-2), (out2, ref2)

    # Auto-tiled path (multi-step "parallel" grid, ragged last block) at moderate B.
    Bc = 300
    kv3, ka3 = jax.random.split(ka2)
    vf3 = jax.random.normal(kv3, (Bc, VIDEO_FEAT), jnp.float32)
    ah3 = jax.random.normal(ka3, (Bc, T, AUDIO_HID), jnp.float32)
    out3 = matching_head(vf3, ah3, params)
    jax.block_until_ready(out3)
    ref3 = reference(vf3, ah3, params)
    assert out3.shape == (Bc, 1), out3.shape
    assert jnp.allclose(out3, ref3, atol=2e-2, rtol=2e-2), (out3, ref3)

    print("KERNEL_OK")
</pallas_src>

<mosaic_0001>
module attributes {stable_mosaic.version = 11 : i64} {
  func.func @head_kernel(%arg0: i32, %arg1: memref<2x512xf32, #tpu.memory_space<vmem>>, %arg2: memref<2x8x768xf32, #tpu.memory_space<vmem>>, %arg3: memref<512x64xbf16, #tpu.memory_space<vmem>>, %arg4: memref<768x64xbf16, #tpu.memory_space<vmem>>, %arg5: memref<3x64xf32, #tpu.memory_space<vmem>>, %arg6: memref<2x8xf32, #tpu.memory_space<vmem>>) attributes {dimension_semantics = [#tpu.dimension_semantics<parallel>], iteration_bounds = array<i64: 1>, scalar_prefetch = 0 : i64, scratch_operands = 0 : i64, tpu.core_type = #tpu.core_type<tc>, window_params = [{transform_indices = @transform_0, window_bounds = array<i64: 2, 512>}, {transform_indices = @transform_1, window_bounds = array<i64: 2, 8, 768>}, {pipeline_mode = #tpu.pipeline_mode<synchronous>, transform_indices = @transform_2, window_bounds = array<i64: 512, 64>}, {pipeline_mode = #tpu.pipeline_mode<synchronous>, transform_indices = @transform_3, window_bounds = array<i64: 768, 64>}, {pipeline_mode = #tpu.pipeline_mode<synchronous>, transform_indices = @transform_4, window_bounds = array<i64: 3, 64>}, {transform_indices = @transform_5, window_bounds = array<i64: 2, 8>}]} {
    %c0 = arith.constant 0 : index
    %c0_0 = arith.constant 0 : index
    %c0_1 = arith.constant 0 : index
    %0 = vector.load %arg2[%c0, %c0_0, %c0_1] : memref<2x8x768xf32, #tpu.memory_space<vmem>>, vector<2x8x768xf32>
    %cst = arith.constant dense<0.000000e+00> : vector<2x768xf32>
    %1 = vector.multi_reduction <add>, %0, %cst [1] : vector<2x8x768xf32> to vector<2x768xf32>
    %c0_2 = arith.constant 0 : index
    %c0_3 = arith.constant 0 : index
    %2 = vector.load %arg1[%c0_2, %c0_3] : memref<2x512xf32, #tpu.memory_space<vmem>>, vector<2x512xf32>
    %3 = arith.truncf %2 : vector<2x512xf32> to vector<2x512xbf16>
    %c0_4 = arith.constant 0 : index
    %c0_5 = arith.constant 0 : index
    %4 = vector.load %arg3[%c0_4, %c0_5] : memref<512x64xbf16, #tpu.memory_space<vmem>>, vector<512x64xbf16>
    %cst_6 = arith.constant dense<0.000000e+00> : vector<2x64xf32>
    %5 = tpu.matmul %3, %4, %cst_6 {dimension_numbers = #tpu.dot_dimension_numbers<[1], [0], [0], [1], [0, 0, 1, 1], [], []>} : vector<2x512xbf16>, vector<512x64xbf16>, vector<2x64xf32> -> vector<2x64xf32>
    %6 = arith.truncf %1 : vector<2x768xf32> to vector<2x768xbf16>
    %c0_7 = arith.constant 0 : index
    %c0_8 = arith.constant 0 : index
    %7 = vector.load %arg4[%c0_7, %c0_8] : memref<768x64xbf16, #tpu.memory_space<vmem>>, vector<768x64xbf16>
    %cst_9 = arith.constant dense<0.000000e+00> : vector<2x64xf32>
    %8 = tpu.matmul %6, %7, %cst_9 {dimension_numbers = #tpu.dot_dimension_numbers<[1], [0], [0], [1], [0, 0, 1, 1], [], []>} : vector<2x768xbf16>, vector<768x64xbf16>, vector<2x64xf32> -> vector<2x64xf32>
    %9 = arith.addf %5, %8 : vector<2x64xf32>
    %c0_10 = arith.constant 0 : index
    %c0_11 = arith.constant 0 : index
    %10 = vector.load %arg5[%c0_10, %c0_11] : memref<3x64xf32, #tpu.memory_space<vmem>>, vector<1x64xf32>
    %11 = vector.broadcast %10 : vector<1x64xf32> to vector<2x64xf32>
    %12 = arith.addf %9, %11 : vector<2x64xf32>
    %cst_12 = arith.constant 0.000000e+00 : f32
    %13 = vector.broadcast %cst_12 : f32 to vector<2x64xf32>
    %14 = arith.maximumf %12, %13 : vector<2x64xf32>
    %c1 = arith.constant 1 : index
    %c0_13 = arith.constant 0 : index
    %15 = vector.load %arg5[%c1, %c0_13] : memref<3x64xf32, #tpu.memory_space<vmem>>, vector<1x64xf32>
    %16 = vector.broadcast %15 : vector<1x64xf32> to vector<2x64xf32>
    %17 = arith.mulf %14, %16 : vector<2x64xf32>
    %cst_14 = arith.constant dense<0.000000e+00> : vector<2xf32>
    %18 = vector.multi_reduction <add>, %17, %cst_14 [1] : vector<2x64xf32> to vector<2xf32>
    %19 = vector.shape_cast %18 : vector<2xf32> to vector<2x1xf32>
    %c2 = arith.constant 2 : index
    %c0_15 = arith.constant 0 : index
    %20 = vector.load %arg5[%c2, %c0_15] : memref<3x64xf32, #tpu.memory_space<vmem>>, vector<1x1xf32>
    %21 = vector.broadcast %20 : vector<1x1xf32> to vector<2x1xf32>
    %22 = arith.addf %19, %21 : vector<2x1xf32>
    %23 = arith.negf %22 : vector<2x1xf32>
    %24 = math.exp %23 : vector<2x1xf32>
    %cst_16 = arith.constant 1.000000e+00 : f32
    %25 = vector.broadcast %cst_16 : f32 to vector<2x1xf32>
    %26 = arith.addf %25, %24 : vector<2x1xf32>
    %27 = arith.divf %25, %26 : vector<2x1xf32>
    %28 = vector.shape_cast %27 : vector<2x1xf32> to vector<2x1xf32>
    %29 = vector.broadcast %28 : vector<2x1xf32> to vector<2x8xf32>
    %c0_17 = arith.constant 0 : index
    %c0_18 = arith.constant 0 : index
    %30 = vector.load %arg6[%c0_17, %c0_18] : memref<2x8xf32, #tpu.memory_space<vmem>>, vector<2x8xf32>
    tpu.vector_store %arg6[%c0_17, %c0_18], %29 {strides = array<i32>} : memref<2x8xf32, #tpu.memory_space<vmem>>, vector<2x8xf32>,
    return
  }
  func.func @transform_0(%arg0: i32) -> (i32, i32) {
    %c0_i32 = arith.constant 0 : i32
    %c0_i32_0 = arith.constant 0 : i32
    return %arg0, %c0_i32 : i32, i32
  }
  func.func @transform_1(%arg0: i32) -> (i32, i32, i32) {
    %c0_i32 = arith.constant 0 : i32
    %c0_i32_0 = arith.constant 0 : i32
    %c0_i32_1 = arith.constant 0 : i32
    return %arg0, %c0_i32, %c0_i32_0 : i32, i32, i32
  }
  func.func @transform_2(%arg0: i32) -> (i32, i32) {
    %c0_i32 = arith.constant 0 : i32
    %c0_i32_0 = arith.constant 0 : i32
    %c0_i32_1 = arith.constant 0 : i32
    return %c0_i32, %c0_i32_0 : i32, i32
  }
  func.func @transform_3(%arg0: i32) -> (i32, i32) {
    %c0_i32 = arith.constant 0 : i32
    %c0_i32_0 = arith.constant 0 : i32
    %c0_i32_1 = arith.constant 0 : i32
    return %c0_i32, %c0_i32_0 : i32, i32
  }
  func.func @transform_4(%arg0: i32) -> (i32, i32) {
    %c0_i32 = arith.constant 0 : i32
    %c0_i32_0 = arith.constant 0 : i32
    %c0_i32_1 = arith.constant 0 : i32
    return %c0_i32, %c0_i32_0 : i32, i32
  }
  func.func @transform_5(%arg0: i32) -> (i32, i32) {
    %c0_i32 = arith.constant 0 : i32
    %c0_i32_0 = arith.constant 0 : i32
    return %arg0, %c0_i32 : i32, i32
  }
}

</mosaic_0001>

<bundles_post_ra>
// kernel: tpu_custom_call.1
= control target key start
LH: loop header
LB: loop body
LE: loop exit
PB: predicated region body
PF: predicated region fallthrough
CT: control target
= control target key end

     0   :  { %vm329_vm0 = vcmask 1041409   ;;  %s1719_s0 = inlined_call_operand.vmem [shape: f32[2,512], index: 0, kind: input, shape index: {}]   ;;  %s1720_s1 = inlined_call_operand.vmem [shape: f32[2,8,768], index: 1, kind: input, shape index: {}]   ;;  %s1721_s2 = inlined_call_operand.vmem [shape: bf16[512,64], index: 2, kind: input, shape index: {}]   ;;  %s1722_s3 = inlined_call_operand.vmem [shape: bf16[768,64], index: 3, kind: input, shape index: {}]   ;;  %s1723_s4 = inlined_call_operand.vmem [shape: f32[3,64], index: 4, kind: input, shape index: {}]   ;;  %s1724_s5 = inlined_call_operand.hbm [shape: f32[2,8], index: 5, kind: output, shape index: {}]  }
   0x1   :  { %v1276_v0 = vld [vmem:[%s1722_s3 + $0x78] sm:$0xff]   ;;  %v1280_v4 = vld [vmem:[%s1722_s3 + $0x70] sm:$0xff]   ;;  %v1284_v8 = vld [vmem:[%s1722_s3 + $0x68] sm:$0xff]  }
   0x2   :  { %v1277_v1 = vld [vmem:[%s1722_s3 + $0xf8] sm:$0xff]   ;;  %1162 = vmatprep.subr.bf16.mxu0 %v1276_v0  ;;  %v1281_v5 = vld [vmem:[%s1722_s3 + $0xf0] sm:$0xff]   ;;  %v1285_v9 = vld [vmem:[%s1722_s3 + $0xe8] sm:$0xff]  }
   0x3   :  { %v1278_v2 = vld [vmem:[%s1722_s3 + $0x38] sm:$0xff]   ;;  %1184 = vmatprep.subr.bf16.mxu1 %v1277_v1  ;;  %v1282_v6 = vld [vmem:[%s1722_s3 + $0x30] sm:$0xff]   ;;  %v1286_v10 = vld [vmem:[%s1722_s3 + $0x28] sm:$0xff]  }
   0x4   :  { %v1279_v3 = vld [vmem:[%s1722_s3 + $0xb8] sm:$0xff]   ;;  %1163 = vmatpush3.bf16.msra.mxu0 %v1278_v2  ;;  %v1283_v7 = vld [vmem:[%s1722_s3 + $0xb0] sm:$0xff]   ;;  %v1287_v11 = vld [vmem:[%s1722_s3 + $0xa8] sm:$0xff]  }
   0x5   :  { %1185 = vmatpush3.bf16.msra.mxu1 %v1279_v3  ;;  %1164 = vmatprep.subr.bf16.mxu0 %v1280_v4  ;;  %v1288_v12 = vld [vmem:[%s1722_s3 + $0x60] sm:$0xff]   ;;  %v1292_v16 = vld [vmem:[%s1722_s3 + $0x58] sm:$0xff]   ;;  %v1296_v20 = vld [vmem:[%s1722_s3 + $0x50] sm:$0xff]  }
   0x6   :  { %1186 = vmatprep.subr.bf16.mxu1 %v1281_v5  ;;  %v1289_v13 = vld [vmem:[%s1722_s3 + $0xe0] sm:$0xff]   ;;  %v1293_v17 = vld [vmem:[%s1722_s3 + $0xd8] sm:$0xff]   ;;  %v1297_v21 = vld [vmem:[%s1722_s3 + $0xd0] sm:$0xff]  }
   0x7   :  { %v1290_v14 = vld [vmem:[%s1722_s3 + $0x20] sm:$0xff]   ;;  %v1294_v18 = vld [vmem:[%s1722_s3 + $0x18] sm:$0xff]   ;;  %v1298_v22 = vld [vmem:[%s1722_s3 + $0x10] sm:$0xff]  }
   0x8   :  { %1165 = vmatpush3.bf16.msra.mxu0 %v1282_v6  ;;  %v1291_v15 = vld [vmem:[%s1722_s3 + $0xa0] sm:$0xff]   ;;  %v1295_v19 = vld [vmem:[%s1722_s3 + $0x98] sm:$0xff]   ;;  %v1299_v23 = vld [vmem:[%s1722_s3 + $0x90] sm:$0xff]  }
   0x9   :  { %1187 = vmatpush3.bf16.msra.mxu1 %v1283_v7  ;;  %1166 = vmatprep.subr.bf16.mxu0 %v1284_v8  ;;  %v1300_v24 = vld [vmem:[%s1722_s3 + $0x48] sm:$0xff]   ;;  %v1304_v28 = vld [vmem:[%s1722_s3 + $0x40] sm:$0xff]   ;;  %v29_v33 = vld [vmem:[%s1720_s1 + $0x38] sm:$0xff] }
   0xa   :  { %1188 = vmatprep.subr.bf16.mxu1 %v1285_v9  ;;  %v1301_v25 = vld [vmem:[%s1722_s3 + $0xc8] sm:$0xff]   ;;  %v1305_v29 = vld [vmem:[%s1722_s3 + $0xc0] sm:$0xff]   ;;  %v25_v34 = vld [vmem:[%s1720_s1 + $0x18] sm:$0xff]  ;;  %v76_v36 = vrot.slane %v29_v33, 4 }
   0xb   :  { %v1302_v26 = vld [vmem:[%s1722_s3 + $0x8] sm:$0xff]   ;;  %v1306_v30 = vld [vmem:[%s1722_s3] sm:$0xff]   ;;  %v52_v38 = vrot.slane %v25_v34, 4  ;;  %v28_v40 = vld [vmem:[%s1720_s1 + $0x30] sm:$0xff] }
   0xc   :  { %1167 = vmatpush3.bf16.msra.mxu0 %v1286_v10  ;;  %v1303_v27 = vld [vmem:[%s1722_s3 + $0x88] sm:$0xff]   ;;  %v1307_v31 = vld [vmem:[%s1722_s3 + $0x80] sm:$0xff]   ;;  %v70_v43 = vrot.slane %v28_v40, 4  ;;  %v24_v44 = vld [vmem:[%s1720_s1 + $0x10] sm:$0xff]  ;;  %v77_v48 = vadd.f32 %v76_v36, %v29_v33 }
   0xd   :  { %1189 = vmatpush3.bf16.msra.mxu1 %v1287_v11  ;;  %1168 = vmatprep.subr.bf16.mxu0 %v1288_v12  ;;  %v23_v32 = vld [vmem:[%s1720_s1 + $0x8] sm:$0xff]  ;;  %v22_v39 = vld [vmem:[%s1720_s1] sm:$0xff]  ;;  %v1308_v46 = vld [vmem:[%s1722_s3 + $0x178] sm:$0xff]   ;;  %v53_v49 = vadd.f32 %v52_v38, %v25_v34  ;;  %v46_v50 = vrot.slane %v24_v44, 4 }
   0xe   :  { %1190 = vmatprep.subr.bf16.mxu1 %v1289_v13  ;;  %v40_v35 = vrot.slane %v23_v32, 4  ;;  %v31_v37 = vld [vmem:[%s1720_s1 + $0x48] sm:$0xff]  ;;  %v34_v42 = vrot.slane %v22_v39, 4  ;;  %v30_v45 = vld [vmem:[%s1720_s1 + $0x40] sm:$0xff]  ;;  %v71_v53 = vadd.f32 %v70_v43, %v28_v40  ;;  %v1310_v55 = vld [vmem:[%s1721_s2 + $0x78] sm:$0xff]   ;;  %v78_v57 = vrot.slane %v77_v48, 2 }
   0xf   :  { %v88_v41 = vrot.slane %v31_v37, 4  ;;  %v82_v54 = vrot.slane %v30_v45, 4  ;;  %v54_v58 = vrot.slane %v53_v49, 2  ;;  %v47_v59 = vadd.f32 %v46_v50, %v24_v44  ;;  %v1312_v50 = vld [vmem:[%s1722_s3 + $0x170] sm:$0xff]  }
  0x10   :  { %1169 = vmatpush3.bf16.msra.mxu0 %v1290_v14  ;;  %v41_v47 = vadd.f32 %v40_v35, %v23_v32  ;;  %v35_v52 = vadd.f32 %v34_v42, %v22_v39  ;;  %v72_v62 = vrot.slane %v71_v53, 2  ;;  %v79_v1 = vadd.f32 %v78_v57, %v77_v48  ;;  %v1309_v42 = vld [vmem:[%s1722_s3 + $0x138] sm:$0xff]   ;;  %v1317_v57 = vld [vmem:[%s1722_s3 + $0x128] sm:$0xff]  }
  0x11   :  { %1191 = vmatpush3.bf16.msra.mxu1 %v1291_v15  ;;  %1170 = vmatprep.subr.bf16.mxu0 %v1292_v16  ;;  %v89_v51 = vadd.f32 %v88_v41, %v31_v37  ;;  %v83_v63 = vadd.f32 %v82_v54, %v30_v45  ;;  %v55_v2 = vadd.f32 %v54_v58, %v53_v49  ;;  %v48_v3 = vrot.slane %v47_v59, 2  ;;  %v1314_v54 = vld [vmem:[%s1721_s2 + $0x70] sm:$0xff]   ;;  %v1318_v58 = vld [vmem:[%s1721_s2 + $0x68] sm:$0xff]  }
  0x12   :  { %1192 = vmatprep.subr.bf16.mxu1 %v1293_v17  ;;  %v42_v56 = vrot.slane %v41_v47, 2  ;;  %v36_v61 = vrot.slane %v35_v52, 2  ;;  %v73_v6 = vadd.f32 %v72_v62, %v71_v53  ;;  %v80_v9 = vrot.slane %v79_v1, 1 }
  0x13   :  { %v90_v60 = vrot.slane %v89_v51, 2  ;;  %v84_v7 = vrot.slane %v83_v63, 2  ;;  %v56_v10 = vrot.slane %v55_v2, 1  ;;  %v49_v11 = vadd.f32 %v48_v3, %v47_v59  ;;  %v1319_v59 = vld [vmem:[%s1721_s2 + $0x28] sm:$0xff]   ;;  %v1324_v3 = vld [vmem:[%s1722_s3 + $0x158] sm:$0xff]  }
  0x14   :  { %1171 = vmatpush3.bf16.msra.mxu0 %v1294_v18  ;;  %v43_v0 = vadd.f32 %v42_v56, %v41_v47  ;;  %v37_v5 = vadd.f32 %v36_v61, %v35_v52  ;;  %v74_v14 = vrot.slane %v73_v6, 1  ;;  %v81_v17 = vadd.f32 %v80_v9, %v79_v1  ;;  %v1311_v47 = vld [vmem:[%s1721_s2 + $0x38] sm:$0xff]   ;;  %v1313_v52 = vld [vmem:[%s1722_s3 + $0x130] sm:$0xff]   ;;  %v1316_v56 = vld [vmem:[%s1722_s3 + $0x168] sm:$0xff]  }
  0x15   :  { %1193 = vmatpush3.bf16.msra.mxu1 %v1295_v19  ;;  %1172 = vmatprep.subr.bf16.mxu0 %v1296_v20  ;;  %v91_v4 = vadd.f32 %v90_v60, %v89_v51  ;;  %v85_v15 = vadd.f32 %v84_v7, %v83_v63  ;;  %v57_v18 = vadd.f32 %v56_v10, %v55_v2  ;;  %v50_v19 = vrot.slane %v49_v11, 1  ;;  %v1320_v60 = vld [vmem:[%s1722_s3 + $0x160] sm:$0xff]   ;;  %v1326_v7 = vld [vmem:[%s1721_s2 + $0x58] sm:$0xff]   ;;  %v1328_v9 = vld [vmem:[%s1722_s3 + $0x150] sm:$0xff]  }
  0x16   :  { %1194 = vmatprep.subr.bf16.mxu1 %v1297_v21  ;;  %v44_v8 = vrot.slane %v43_v0, 1  ;;  %v38_v13 = vrot.slane %v37_v5, 1  ;;  %v1383_v61 = vmov 1983009808   ;;  %v112_v63 = vlaneseq  ;;  %v1322_v1 = vld [vmem:[%s1721_s2 + $0x60] sm:$0xff]   ;;  %v27_v10 = vld [vmem:[%s1720_s1 + $0x28] sm:$0xff] }
  0x17   :  { %v92_v12 = vrot.slane %v91_v4, 1  ;;  %v110_v62 = vunpack.c.l.s4 %v1383_v61  ;;  %v1323_v2 = vld [vmem:[%s1721_s2 + $0x20] sm:$0xff]  }
  0x18   :  { %1173 = vmatpush3.bf16.msra.mxu0 %v1298_v22  ;;  %v45_v16 = vadd.f32 %v44_v8, %v43_v0  ;;  %v39_v21 = vadd.f32 %v38_v13, %v37_v5  ;;  %v75_v22 = vadd.f32 %v74_v14, %v73_v6  ;;  %v1321_v0 = vld [vmem:[%s1722_s3 + $0x120] sm:$0xff]   ;;  %v113_v5 = vshrl.u32 %v112_v63, 7  ;;  %v1325_v6 = vld [vmem:[%s1722_s3 + $0x118] sm:$0xff]   ;;  %v1330_v13 = vld [vmem:[%s1721_s2 + $0x50] sm:$0xff]  }
  0x19   :  { %1195 = vmatpush3.bf16.msra.mxu1 %v1299_v23  ;;  %1174 = vmatprep.subr.bf16.mxu0 %v1300_v24  ;;  %v93_v20 = vadd.f32 %v92_v12, %v91_v4  ;;  %v86_v23 = vrot.slane %v85_v15, 1  ;;  %v111_v4 = vunpack.c.0.s8 %v110_v62  ;;  %v1327_v8 = vld [vmem:[%s1721_s2 + $0x18] sm:$0xff]   ;;  %v64_v14 = vrot.slane %v27_v10, 4 }
  0x1a   :  { %1196 = vmatprep.subr.bf16.mxu1 %v1301_v25  ;;  %v198_v24 = vpack.c.bf16 %v45_v16, %v45_v16  ;;  %v204_v25 = vpack.c.bf16 %v81_v17, %v81_v17  ;;  %v26_v16 = vld [vmem:[%s1720_s1 + $0x20] sm:$0xff]  ;;  %v32_v17 = vld [vmem:[%s1720_s1 + $0x50] sm:$0xff] }
  0x1b   :  { %v114_v12 = vsub.s32 %v111_v4, %v113_v5 }
  0x1c   :  { %1175 = vmatpush3.bf16.msra.mxu0 %v1302_v26  ;;  %v200_v26 = vpack.c.bf16 %v57_v18, %v57_v18  ;;  %v318_v32 = vunpack.c.l.b16 %v198_v24  ;;  %v324_v33 = vunpack.c.l.b16 %v204_v25  ;;  %v58_v18 = vrot.slane %v26_v16, 4  ;;  %v1332_v24 = vld [vmem:[%s1722_s3 + $0x148] sm:$0xff]  }
  0x1d   :  { %1197 = vmatpush3.bf16.msra.mxu1 %v1303_v27  ;;  %1176 = vmatprep.subr.bf16.mxu0 %v1304_v28  ;;  %v51_v27 = vadd.f32 %v50_v19, %v49_v11  ;;  %v206_v28 = vpack.c.bf16 %v93_v20, %v93_v20  ;;  %v33_v11 = vld [vmem:[%s1720_s1 + $0x58] sm:$0xff]  ;;  %v1329_v19 = vld [vmem:[%s1722_s3 + $0x110] sm:$0xff]   ;;  %v65_v20 = vadd.f32 %v64_v14, %v27_v10 }
  0x1e   :  { %1198 = vmatprep.subr.bf16.mxu1 %v1305_v29  ;;  %v197_v29 = vpack.c.bf16 %v39_v21, %v39_v21  ;;  %v320_v34 = vunpack.c.l.b16 %v200_v26  ;;  %v331_v40 = vsel %vm329_vm0, %v324_v33, %v318_v32  ;;  %v59_v25 = vadd.f32 %v58_v18, %v26_v16  ;;  %v1334_v32 = vld [vmem:[%s1721_s2 + $0x48] sm:$0xff]  }
  0x1f   :  { %v199_v35 = vpack.c.bf16 %v51_v27, %v51_v27  ;;  %v326_v36 = vunpack.c.l.b16 %v206_v28  ;;  %v337_v43 = vpack.c.b16 %v331_v40, %v331_v40  ;;  %v1331_v27 = vld [vmem:[%s1721_s2 + $0x10] sm:$0xff]   ;;  %v1333_v28 = vld [vmem:[%s1722_s3 + $0x108] sm:$0xff]  }
  0x20   :  { %1177 = vmatpush3.bf16.msra.mxu0 %v1306_v30  ;;  %v203_v30 = vpack.c.bf16 %v75_v22, %v75_v22  ;;  %v317_v37 = vunpack.c.l.b16 %v197_v29  ;;  %v94_v22 = vrot.slane %v32_v17, 4  ;;  %v66_v29 = vrot.slane %v65_v20, 2 }
  0x21   :  { %1199 = vmatpush3.bf16.msra.mxu1 %v1307_v31  ;;  %1206 = vmatprep.subr.bf16.mxu0 %v1308_v46  ;;  %v87_v31 = vadd.f32 %v86_v23, %v85_v15  ;;  %v319_v41 = vunpack.c.l.b16 %v199_v35  ;;  %v333_v44 = vsel %vm329_vm0, %v326_v36, %v320_v34  ;;  %v100_v15 = vrot.slane %v33_v11, 4  ;;  %v106_v23 = vld [vmem:[%s1719_s0] sm:$0xff] }
  0x22   :  { %1228 = vmatprep.subr.bf16.mxu1 %v1310_v55  ;;  %v323_v38 = vunpack.c.l.b16 %v203_v30  ;;  %v339_v48 = vpack.c.b16 %v333_v44, %v333_v44  ;;  %668 = vmatprep.mubr.bf16.mxu0 %v337_v43  ;;  %v1315_v55 = vld [vmem:[%s1721_s2 + $0x30] sm:$0xff]   ;;  %v1627_v26 = vrot.slane %v106_v23, %v114_v12  ;;  %v60_v33 = vrot.slane %v59_v25, 2  ;;  %v1336_v35 = vld [vmem:[%s1722_s3 + $0x140] sm:$0xff]  }
  0x23   :  { %v205_v39 = vpack.c.bf16 %v87_v31, %v87_v31  ;;  %v101_v21 = vadd.f32 %v100_v15, %v33_v11  ;;  %v95_v31 = vadd.f32 %v94_v22, %v32_v17  ;;  %v67_v36 = vadd.f32 %v66_v29, %v65_v20  ;;  %v1337_v43 = vld [vmem:[%s1722_s3 + $0x100] sm:$0xff]  }
  0x24   :  { %v330_v45 = vsel %vm329_vm0, %v323_v38, %v317_v37  ;;  %708 = vmatprep.mubr.bf16.mxu1 %v339_v48  ;;  %v123_v34 = vcombine.high %v1627_v26, %v1627_v26  ;;  %v61_v40 = vadd.f32 %v60_v33, %v59_v25 }
  0x25   :  { %v325_v46 = vunpack.c.l.b16 %v205_v39  ;;  %v336_v49 = vpack.c.b16 %v330_v45, %v330_v45  ;;  %v102_v30 = vrot.slane %v101_v21, 2  ;;  %v96_v38 = vrot.slane %v95_v31, 2 }
  0x26   :  { %v108_v39 = vcombine.high %v106_v23, %v106_v23  ;;  %v68_v44 = vrot.slane %v67_v36, 1  ;;  %v62_v48 = vrot.slane %v61_v40, 1 }
  0x27   :  { %v332_v51 = vsel %vm329_vm0, %v325_v46, %v319_v41  ;;  %669 = vmatmul.mubr.bf16.vlgmr.msra.gmra.mxu0 %v336_v49  ;;  %v103_v37 = vadd.f32 %v102_v30, %v101_v21  ;;  %v130_v41 = vpack.c.bf16 %v123_v34, %v123_v34  ;;  %v97_v46 = vadd.f32 %v96_v38, %v95_v31 }
  0x28   :  { %v338_v53 = vpack.c.b16 %v332_v51, %v332_v51  ;;  %1207 = vmatpush3.bf16.msra.mxu0 %v1309_v42  ;;  %v1335_v42 = vld [vmem:[%s1721_s2 + $0x8] sm:$0xff]   ;;  %v69_v49 = vadd.f32 %v68_v44, %v67_v36 }
  0x29   :  { %1208 = vmatprep.subr.bf16.mxu0 %v1312_v50  ;;  %v104_v45 = vrot.slane %v103_v37, 1  ;;  %v98_v51 = vrot.slane %v97_v46, 1 }
  0x2a   :  { %709 = vmatmul.mubr.bf16.vlgmr.msra.gmra.mxu1 %v338_v53  ;;  %v122_v53 = vrot.slane %v108_v39, %v114_v12 }
  0x2b   :  { %1229 = vmatpush3.bf16.msra.mxu1 %v1311_v47  ;;  %v1338_v47 = vld [vmem:[%s1721_s2 + $0x40] sm:$0xff]   ;;  %980 = vmatprep.mubr.bf16.mxu1 %v130_v41  ;;  %v105_v50 = vadd.f32 %v104_v45, %v103_v37 }
  0x2c   :  { %1230 = vmatprep.subr.bf16.mxu1 %v1314_v54  ;;  %1209 = vmatpush3.bf16.msra.mxu0 %v1313_v52  ;;  %v1340_v52 = vld [vmem:[%s1721_s2 + $0xf8] sm:$0xff]   ;;  %v63_v54 = vadd.f32 %v62_v48, %v61_v40  ;;  %v124_v63 = vcombine.high %v122_v53, %v122_v53 }
  0x2d   :  { %1210 = vmatprep.subr.bf16.mxu0 %v1316_v56  ;;  %v208_v56 = vpack.c.bf16 %v105_v50, %v105_v50 }
  0x2f   :  { %1231 = vmatpush3.bf16.msra.mxu1 %v1315_v55  ;;  %v202_v55 = vpack.c.bf16 %v69_v49, %v69_v49  ;;  %v328_v61 = vunpack.c.l.b16 %v208_v56 }
  0x30   :  { %1232 = vmatprep.subr.bf16.mxu1 %v1318_v58  ;;  %1211 = vmatpush3.bf16.msra.mxu0 %v1317_v57  ;;  %v1339_v57 = vld [vmem:[%s1721_s2] sm:$0xff]   ;;  %v99_v58 = vadd.f32 %v98_v51, %v97_v46 }
  0x31   :  { %1212 = vmatprep.subr.bf16.mxu0 %v1320_v60  ;;  %v322_v60 = vunpack.c.l.b16 %v202_v55 }
  0x32   :  { %v207_v62 = vpack.c.bf16 %v99_v58, %v99_v58 }
  0x33   :  { %1233 = vmatpush3.bf16.msra.mxu1 %v1319_v59  ;;  %v201_v59 = vpack.c.bf16 %v63_v54, %v63_v54 }
  0x34   :  { %1234 = vmatprep.subr.bf16.mxu1 %v1322_v1  ;;  %1213 = vmatpush3.bf16.msra.mxu0 %v1321_v0  ;;  %v129_v1 = vpack.c.bf16 %v1627_v26, %v1627_v26 }
  0x35   :  { %1214 = vmatprep.subr.bf16.mxu0 %v1324_v3  ;;  %v321_v0 = vunpack.c.l.b16 %v201_v59  ;;  %v327_v3 = vunpack.c.l.b16 %v207_v62 }
  0x37   :  { %1235 = vmatpush3.bf16.msra.mxu1 %v1323_v2  ;;  %v335_v2 = vsel %vm329_vm0, %v328_v61, %v322_v60 }
  0x38   :  { %1236 = vmatprep.subr.bf16.mxu1 %v1326_v7  ;;  %1215 = vmatpush3.bf16.msra.mxu0 %v1325_v6  ;;  %v341_v4 = vpack.c.b16 %v335_v2, %v335_v2 }
  0x39   :  { %1216 = vmatprep.subr.bf16.mxu0 %v1328_v9 }
  0x3b   :  { %1237 = vmatpush3.bf16.msra.mxu1 %v1327_v8 }
  0x3c   :  { %1238 = vmatprep.subr.bf16.mxu1 %v1330_v13  ;;  %1217 = vmatpush3.bf16.msra.mxu0 %v1329_v19 }
  0x3d   :  { %1218 = vmatprep.subr.bf16.mxu0 %v1332_v24 }
  0x3f   :  { %1239 = vmatpush3.bf16.msra.mxu1 %v1331_v27 }
  0x40   :  { %1240 = vmatprep.subr.bf16.mxu1 %v1334_v32  ;;  %1219 = vmatpush3.bf16.msra.mxu0 %v1333_v28 }
  0x41   :  { %1220 = vmatprep.subr.bf16.mxu0 %v1336_v35 }
  0x43   :  { %1241 = vmatpush3.bf16.msra.mxu1 %v1335_v42 }
  0x44   :  { %1242 = vmatprep.subr.bf16.mxu1 %v1338_v47  ;;  %1221 = vmatpush3.bf16.msra.mxu0 %v1337_v43 }
  0x45   :  { %1250 = vmatprep.subr.bf16.mxu0 %v1340_v52 }
  0x47   :  { %1243 = vmatpush3.bf16.msra.mxu1 %v1339_v57 }
  0x48   :  { %10 = vsyncpa [#allocation3], 0  ;;  %v334_v5 = vsel %vm329_vm0, %v327_v3, %v321_v0  ;;  %v1341_v6 = vld [vmem:[%s1721_s2 + $0xb8] sm:$0xff]   ;;  %v132_v7 = vpack.c.bf16 %v124_v63, %v124_v63  ;;  %748 = vmatprep.mubr.bf16.mxu0 %v341_v4  ;;  %v1342_v9 = vld [vmem:[%s1721_s2 + $0xf0] sm:$0xff]   ;;  %v131_v23 = vpack.c.bf16 %v122_v53, %v122_v53  ;;  %vm1041_vm1 = vcmask 517120   ;;  %s1385_s28 = smov [#allocation2]  }
  0x49   :  { %v340_v8 = vpack.c.b16 %v334_v5, %v334_v5  ;;  %v1343_v10 = vld [vmem:[%s1721_s2 + $0xb0] sm:$0xff]   ;;  %v1344_v11 = vld [vmem:[%s1721_s2 + $0xe8] sm:$0xff]   ;;  %v1346_v13 = vld [vmem:[%s1721_s2 + $0xe0] sm:$0xff]   ;;  %v1384_v59 = vmov 0   ;;  %s1070_s29 = sshll.u32 %s1385_s28, 4  ;;  %vm1062_vm2 = vcmask 58368   ;;  %s1071_s29 = int_to_ptr.vmem [resolvable:$true] %s1070_s29 }
  0x4a   :  { %981 = vmatmul.mubr.bf16.vlgmr.msra.gmra.mxu1 %v129_v1  ;;  %v1345_v12 = vld [vmem:[%s1721_s2 + $0xa8] sm:$0xff]   ;;  %v1347_v14 = vld [vmem:[%s1721_s2 + $0xa0] sm:$0xff]   ;;  %v1348_v15 = vld [vmem:[%s1721_s2 + $0xd8] sm:$0xff]   ;;  %1275 = vset.pattern.permute.xlu0 %v1384_v59  ;;  %s1361_s30 = scalar_lea.vmem %s1071_s29, 32  ;;  %p1366_p1 = scmp.lt.s32.totalorder %s1071_s29, %s1071_s29 }
  0x4b   :  { %749 = vmatmul.mubr.bf16.vlgmr.msra.gmra.mxu0 %v340_v8  ;;  %v1349_v16 = vld [vmem:[%s1721_s2 + $0x98] sm:$0xff]   ;;  %v1350_v17 = vld [vmem:[%s1721_s2 + $0xd0] sm:$0xff]   ;;  %v1352_v19 = vld [vmem:[%s1721_s2 + $0xc8] sm:$0xff]   ;;  %p1362_p0 = scmp.ne.s32.totalorder %s1071_s29, %s1361_s30  ;;  %p1367_p2 = scmp.lt.s32.totalorder %s1361_s30, %s1361_s30 }
  0x4c   :  { %1251 = vmatpush3.bf16.msra.mxu0 %v1341_v6  ;;  %1020 = vmatprep.mubr.bf16.mxu0 %v132_v7  ;;  %v1351_v18 = vld [vmem:[%s1721_s2 + $0x90] sm:$0xff]   ;;  %v1353_v20 = vld [vmem:[%s1721_s2 + $0x88] sm:$0xff]   ;;  %v1354_v21 = vld [vmem:[%s1721_s2 + $0xc0] sm:$0xff]  }
  0x4d   :  { %1252 = vmatprep.subr.bf16.mxu0 %v1342_v9  ;;  %v1355_v22 = vld [vmem:[%s1721_s2 + $0x80] sm:$0xff]   ;;  %p1368_p3 = por %p1367_p2, %p1366_p1 }
  0x4e   :  { %v1158_v51 = vld [vmem:[%s1723_s4] ss:$0 sm:$0xff]  ;;  %v1159_v55 = vld [vmem:[%s1723_s4 + $0x1] ss:$0 sm:$0xff]  ;;  %v1160_v60 = vld [vmem:[%s1723_s4 + $0x2] ss:$0 sm:$0xff] }
  0x4f   :  { %p1369_p4 = pnand %p1368_p3, %p1362_p0 }
  0x50   :  { %1253 = vmatpush3.bf16.msra.mxu0 %v1343_v10 }
  0x51   :  { %1254 = vmatprep.subr.bf16.mxu0 %v1344_v11 }
  0x54   :  { %1255 = vmatpush3.bf16.msra.mxu0 %v1345_v12 }
  0x55   :  { %1256 = vmatprep.subr.bf16.mxu0 %v1346_v13 }
  0x58   :  { %1257 = vmatpush3.bf16.msra.mxu0 %v1347_v14 }
  0x59   :  { %1258 = vmatprep.subr.bf16.mxu0 %v1348_v15 }
  0x5c   :  { %1259 = vmatpush3.bf16.msra.mxu0 %v1349_v16 }
  0x5d   :  { %1260 = vmatprep.subr.bf16.mxu0 %v1350_v17 }
  0x60   :  { %1261 = vmatpush3.bf16.msra.mxu0 %v1351_v18 }
  0x61   :  { %1262 = vmatprep.subr.bf16.mxu0 %v1352_v19 }
  0x64   :  { %1263 = vmatpush3.bf16.msra.mxu0 %v1353_v20 }
  0x65   :  { %1264 = vmatprep.subr.bf16.mxu0 %v1354_v21 }
  0x68   :  { %1265 = vmatpush3.bf16.msra.mxu0 %v1355_v22 }
  0x6b   :  { %1021 = vmatmul.mubr.bf16.vlgmr.msra.gmra.mxu0 %v131_v23 }
  0xe7   :  { %v1178_v24 = vpop.f32.mrf.mxu0 }
  0xe9   :  { %v1179_v26 = vpop.f32.mrf.mxu0 }
  0xea   :  { %v1200_v25 = vpop.f32.mrf.mxu1  ;;  %v1180_v40 = vadd.f32 %v1179_v26, %v1178_v24 }
  0xeb   :  { %v1181_v28 = vpop.f32.mrf.mxu0 }
  0xec   :  { %v1201_v27 = vpop.f32.mrf.mxu1 }
  0xed   :  { %v1182_v29 = vpop.f32.mrf.mxu0  ;;  %v1202_v41 = vadd.f32 %v1201_v27, %v1200_v25 }
  0xee   :  { %v1203_v30 = vpop.f32.mrf.mxu1 }
  0xef   :  { %v711_v43 = vadd.f32 %v1202_v41, %v1180_v40 }
  0xf0   :  { %v1204_v31 = vpop.f32.mrf.mxu1 }
 0x10a   :  { %v1244_v32 = vpop.f32.mrf.mxu1 }
 0x10b   :  { %v1222_v33 = vpop.f32.mrf.mxu0 }
 0x10c   :  { %v1245_v34 = vpop.f32.mrf.mxu1 }
 0x10d   :  { %v1223_v35 = vpop.f32.mrf.mxu0  ;;  %v1246_v45 = vadd.f32 %v1245_v34, %v1244_v32 }
 0x10e   :  { %v1247_v36 = vpop.f32.mrf.mxu1  ;;  %v1224_v42 = vadd.f32 %v1223_v35, %v1222_v33 }
 0x10f   :  { %v1225_v37 = vpop.f32.mrf.mxu0 }
 0x110   :  { %v1248_v38 = vpop.f32.mrf.mxu1  ;;  %v751_v44 = vadd.f32 %v1224_v42, %v711_v43 }
 0x111   :  { %v1226_v39 = vpop.f32.mrf.mxu0 }
 0x112   :  { %v983_v48 = vadd.f32 %v1246_v45, %v751_v44 }
 0x12b   :  { %v1266_v46 = vpop.f32.mrf.mxu0 }
 0x12d   :  { %v1267_v47 = vpop.f32.mrf.mxu0 }
 0x12e   :  { %v1268_v49 = vadd.f32 %v1267_v47, %v1266_v46 }
 0x12f   :  { %v1269_v50 = vpop.f32.mrf.mxu0 }
 0x130   :  { %v1023_v52 = vadd.f32 %v1268_v49, %v983_v48 }
 0x131   :  { %v1270_v53 = vpop.f32.mrf.mxu0 }
 0x132   :  { %v1033_v54 = vadd.f32 %v1158_v51, %v1023_v52 }
 0x134   :  { %v1034_v56 = vmax.f32 %v1033_v54, 0.0 }
 0x136   :  { %v1040_v57 = vmul.f32 %v1159_v55, %v1034_v56 }
 0x138   :  { %v1042_v58 = vsel %vm1041_vm1, %v1040_v57, 0.0 }
 0x139   :  { %1043 = vadd.xlane.f32.xlu0 %v1042_v58 }
 0x1c2   :  { %v1044_v61 = vpop.xlane.xlu0 %1043 }
 0x1c3   :  { %v1050_v62 = vadd.f32 %v1160_v60, %v1044_v61 }
 0x1c5   :  { %v1161_v63 = vmul.f32 -1.442695, %v1050_v62 }
 0x1c7   :  { %1357 = vpow2.f32 %v1161_v63 }
 0x1d4   :  { %v1358_v0 = vpop.eup %1357 }
 0x1d5   :  { %v1054_v1 = vadd.f32 1.0, %v1358_v0 }
 0x1d7   :  { %1359 = vrcp.f32 %v1054_v1 }
 0x1e4   :  { %v1360_v2 = vpop.eup %1359 }
 0x1e5   :  { %1059 = vperm.xlu0 %1275, %v1360_v2  }
 0x260   :  { %v1060_v3 = vpop.permute.xlu0 %1059 }
 0x261   :  { %1063 = vst.msk [vmem:[#allocation2] sm:$0x3] %vm1062_vm2, %v1060_v3 }
 0x262   :  { %1372 = shalt.err (!%p1369_p4)
}
 0x263   :  { %1073 = dma.vmem_to_hbm [thread:$0]  %s1071_s29, 32, %s1724_s5, [#allocation3]  }
 0x264   :  { %1381 = dma.done.wait [#allocation3], 32  }
 0x265   :  { %1382 = vsyncadd [#allocation3], 4294967264 }
 0x266   :  { %1077 = vsyncpa [#allocation3], 1 }

</bundles_post_ra>
